<compile_context>
chip_gen: v7x
topology: tpu7x:2x2x1
jax: 0.10.0
libtpu: 0.0.40
codegen_flags: <defaults>
</compile_context>

<pallas_src>
import jax
import jax.numpy as jnp
from jax.experimental import pallas as pl
from jax.experimental.pallas import tpu as pltpu


_LANE = 128     # last-dim tiling quantum (vreg lanes)
_SUBLANE = 8    # second-to-last-dim quantum (vreg sublanes)


def _round_up(n, m):
    return ((n + m - 1) // m) * m


def _vmem_budget_bytes():
    """~75% of physical per-core VMEM, leaving room for Mosaic internal scratch.

    v7x: 64 MiB -> 48 MiB; v5e/v6e: 128 MiB -> 96 MiB. Fallback is v7x-safe.
    """
    cap = None
    try:
        cap = getattr(pltpu.get_tpu_info(), "vmem_capacity_bytes", None)
    except Exception:
        cap = None
    if not cap:
        cap = 64 * 1024 * 1024
    return (int(cap) * 3) // 4


def _pick_tb(B):
    """Batch tile: sublane multiple; >= 2 grid steps whenever B >= 16 so both
    of v7x's TensorCores get work via the "parallel" batch grid axis."""
    if B <= _SUBLANE:
        return B                       # single full-dim tile (legal block shape)
    if B >= 1024:
        tb = 512
    elif B >= 512:
        tb = 256                       # MXU-native quantum on v6e/v7x (2x256x256)
    else:
        tb = 128
    return min(tb, _round_up(pl.cdiv(B, 2), _SUBLANE))


def concat_models_kernel(x_ref, w1_ref, b1_ref, w2_ref, b2_ref, o_ref, h_ref):
    # model_1: Linear(D_in -> H). Computed once per batch tile (j == 0) and
    # cached in VMEM scratch; reused for every D_out tile j. The intermediate
    # activation never touches HBM.
    @pl.when(pl.program_id(1) == 0)
    def _():
        xs = x_ref[...].astype(w1_ref.dtype)      # cast on the VPU, not in HBM
        h = jnp.dot(xs, w1_ref[...], preferred_element_type=jnp.float32)
        h_ref[...] = (h + b1_ref[...]).astype(h_ref.dtype)

    # model_2: Linear(H -> D_out) on the cached activation (f32 accumulation).
    o_ref[...] = (jnp.dot(h_ref[...], w2_ref[...],
                          preferred_element_type=jnp.float32)
                  + b2_ref[...]).astype(o_ref.dtype)


def concat_models_forward(x, w1, b1, w2, b2, *, tb=None, compute_dtype=None):
    """Fused forward of Concat_models(model_1=Linear, model_2=Linear).

    x : [B, D_in]
    w1: [D_in, H]   (== torch model_1.weight.T)   b1: [H] or [1, H]
    w2: [H, D_out]  (== torch model_2.weight.T)   b2: [D_out] or [1, D_out]
    Returns [B, D_out] = (x @ w1 + b1) @ w2 + b2, in x.dtype.

    compute_dtype: MXU input dtype (default: x.dtype). jnp.bfloat16 is
    recommended on v6e/v7x; accumulation stays f32 but the cached intermediate
    is then bf16 (documented precision trade-off).
    """
    B, D_in = x.shape
    H = w1.shape[1]
    D_out = w2.shape[1]
    b1 = jnp.asarray(b1).reshape(1, H)
    b2 = jnp.asarray(b2).reshape(1, D_out)

    cd = jnp.dtype(compute_dtype if compute_dtype is not None else x.dtype)
    out_dtype = x.dtype

    # Only the (tiny) weights/biases are padded (H -> lane multiple). x and the
    # output are NOT repacked in HBM: block last dims equal to the full array
    # dims are legal, Mosaic pads the MXU contraction internally, and the
    # zero-padded W1 columns / W2 rows contribute nothing.
    H_p = _round_up(H, _LANE)
    w1p = jnp.pad(w1, ((0, 0), (0, H_p - H))).astype(cd)
    b1p = jnp.pad(b1, ((0, 0), (0, H_p - H))).astype(jnp.float32)
    w2p = jnp.pad(w2, ((0, H_p - H), (0, 0))).astype(cd)
    b2p = b2.astype(jnp.float32)

    if tb is None:
        tb = _pick_tb(B)
    tb = B if B <= _SUBLANE else min(_round_up(tb, _SUBLANE),
                                     _round_up(B, _SUBLANE))

    x_size = jnp.dtype(x.dtype).itemsize
    cd_size = cd.itemsize
    out_size = jnp.dtype(out_dtype).itemsize
    budget = _vmem_budget_bytes()

    def _vmem_needed(tb_, tn_):
        n_j_ = pl.cdiv(D_out, tn_)
        w2_bufs = 1 if n_j_ == 1 else 2           # Buffered(1) when grid-invariant
        return (2 * tb_ * D_in * x_size           # x tile (pipeline double buffer)
                + D_in * H_p * cd_size + H_p * 4  # W1 + b1, single-buffered
                + w2_bufs * (H_p * tn_ * cd_size + tn_ * 4)   # W2 + b2
                + 2 * tb_ * tn_ * out_size        # out tile (double buffer)
                + tb_ * H_p * cd_size             # cached intermediate (scratch)
                + tb_ * H_p * 4 + tb_ * tn_ * 4)  # in-kernel f32 matmul results

    # D_out tile: keep W2 fully resident when it fits; otherwise tile N in
    # 256-quanta (MXU-native on v6e/v7x) so v7x's 64 MiB VMEM is respected,
    # then shrink the batch tile as a last resort.
    tn = D_out
    while _vmem_needed(tb, tn) > budget and tn > 256:
        tn = max(256, _round_up(tn // 2, 256))
    while _vmem_needed(tb, tn) > budget and tb > _SUBLANE:
        tb = max(_SUBLANE, _round_up(tb // 2, _SUBLANE))
    # TODO(synk): add a K grid axis over D_in with an f32 accumulator scratch if
    # W1 alone (D_in * H_p) exceeds the per-generation VMEM budget.

    n_i = pl.cdiv(B, tb)
    n_j = pl.cdiv(D_out, tn)

    vmem_limit = int(min(budget,
                         max(32 * 1024 * 1024,
                             _vmem_needed(tb, tn) + (4 << 20))))

    # Advisory cost estimate on LOGICAL (unpadded) shapes.
    flops = 2 * B * D_in * H + 2 * B * H * D_out
    bytes_accessed = (B * D_in * x_size + D_in * H * cd_size + H * 4
                      + H * D_out * cd_size + D_out * 4 + B * D_out * out_size)
    cost = pl.CostEstimate(flops=int(flops), transcendentals=0,
                           bytes_accessed=int(bytes_accessed))

    def _build(single_buffer_invariants):
        inv_kw = ({"pipeline_mode": pl.Buffered(1)}
                  if (single_buffer_invariants and hasattr(pl, "Buffered"))
                  else {})
        w2_kw = inv_kw if n_j == 1 else {}        # W2/b2 vary over j when N-tiled
        return pl.pallas_call(
            concat_models_kernel,
            out_shape=jax.ShapeDtypeStruct((B, D_out), out_dtype),
            grid=(n_i, n_j),
            in_specs=[
                pl.BlockSpec((tb, D_in), lambda i, j: (i, 0)),             # x
                pl.BlockSpec((D_in, H_p), lambda i, j: (0, 0), **inv_kw),  # W1
                pl.BlockSpec((1, H_p), lambda i, j: (0, 0), **inv_kw),     # b1
                pl.BlockSpec((H_p, tn), lambda i, j: (0, j), **w2_kw),     # W2
                pl.BlockSpec((1, tn), lambda i, j: (0, j), **w2_kw),       # b2
            ],
            out_specs=pl.BlockSpec((tb, tn), lambda i, j: (i, j)),
            scratch_shapes=[pltpu.VMEM((tb, H_p), cd)],
            compiler_params=pltpu.CompilerParams(
                dimension_semantics=("parallel", "arbitrary"),
                vmem_limit_bytes=vmem_limit),
            cost_estimate=cost,
        )

    try:
        return _build(True)(x, w1p, b1p, w2p, b2p)
    except Exception:
        # Fallback for JAX builds that reject single-buffered pipeline_mode.
        return _build(False)(x, w1p, b1p, w2p, b2p)


if __name__ == "__main__":
    # Small logical shapes consistent with the composed-Linear interpretation;
    # batch 256 -> tb=128 -> 2 "parallel" grid steps (exercises both v7x TCs).
    B, D_in, H, D_out = 256, 32, 64, 48

    key = jax.random.PRNGKey(0)
    kx, k1, kb1, k2, kb2 = jax.random.split(key, 5)

    x = jax.random.normal(kx, (B, D_in), dtype=jnp.float32)
    # Deterministic synthetic parameters (shapes mirror nn.Linear weights,
    # stored transposed so the kernel computes x @ W).
    w1 = jax.random.normal(k1, (D_in, H), dtype=jnp.float32) * (1.0 / jnp.sqrt(D_in))
    b1 = jax.random.normal(kb1, (1, H), dtype=jnp.float32) * 0.01
    w2 = jax.random.normal(k2, (H, D_out), dtype=jnp.float32) * (1.0 / jnp.sqrt(H))
    b2 = jax.random.normal(kb2, (1, D_out), dtype=jnp.float32) * 0.01

    # Pure-JAX reference: model_2(model_1(x))
    ref = (x @ w1 + b1) @ w2 + b2

    # f32 path (default): exact to normal tolerance.
    out = concat_models_forward(x, w1, b1, w2, b2)
    out = jax.block_until_ready(out)
    assert out.shape == (B, D_out)
    assert out.dtype == x.dtype
    assert jnp.allclose(out, ref, atol=1e-4, rtol=1e-4)

    # bf16 MXU path (recommended on v6e/v7x): weights bf16, x cast in-kernel,
    # f32 accumulation, bf16 cached intermediate -> loose tolerance vs f32 ref.
    out_bf16 = concat_models_forward(x, w1, b1, w2, b2,
                                     compute_dtype=jnp.bfloat16)
    out_bf16 = jax.block_until_ready(out_bf16)
    assert out_bf16.shape == (B, D_out)
    assert jnp.allclose(out_bf16, ref, atol=2e-1, rtol=2e-1)

    print("KERNEL_OK")
</pallas_src>

<mosaic_0001>
module attributes {stable_mosaic.version = 11 : i64} {
  func.func @concat_models_kernel(%arg0: i32, %arg1: i32, %arg2: memref<128x32xf32, #tpu.memory_space<vmem>>, %arg3: memref<32x128xf32, #tpu.memory_space<vmem>>, %arg4: memref<1x128xf32, #tpu.memory_space<vmem>>, %arg5: memref<128x48xf32, #tpu.memory_space<vmem>>, %arg6: memref<1x48xf32, #tpu.memory_space<vmem>>, %arg7: memref<128x48xf32, #tpu.memory_space<vmem>>, %arg8: memref<128x128xf32, #tpu.memory_space<vmem>>) attributes {dimension_semantics = [#tpu.dimension_semantics<parallel>, #tpu.dimension_semantics<arbitrary>], iteration_bounds = array<i64: 2, 1>, scalar_prefetch = 0 : i64, scratch_operands = 1 : i64, tpu.core_type = #tpu.core_type<tc>, window_params = [{transform_indices = @transform_0, window_bounds = array<i64: 128, 32>}, {pipeline_mode = #tpu.pipeline_mode<synchronous>, transform_indices = @transform_1, window_bounds = array<i64: 32, 128>}, {pipeline_mode = #tpu.pipeline_mode<synchronous>, transform_indices = @transform_2, window_bounds = array<i64: 1, 128>}, {pipeline_mode = #tpu.pipeline_mode<synchronous>, transform_indices = @transform_3, window_bounds = array<i64: 128, 48>}, {pipeline_mode = #tpu.pipeline_mode<synchronous>, transform_indices = @transform_4, window_bounds = array<i64: 1, 48>}, {transform_indices = @transform_5, window_bounds = array<i64: 128, 48>}]} {
    %c0_i32 = arith.constant 0 : i32
    %0 = arith.cmpi eq, %arg1, %c0_i32 : i32
    %1 = arith.extui %0 : i1 to i32
    %c0_i32_0 = arith.constant 0 : i32
    %2 = arith.cmpi ne, %1, %c0_i32_0 : i32
    scf.if %2 {
      %c0_8 = arith.constant 0 : index
      %c0_9 = arith.constant 0 : index
      %10 = vector.load %arg2[%c0_8, %c0_9] : memref<128x32xf32, #tpu.memory_space<vmem>>, vector<128x32xf32>
      %c0_10 = arith.constant 0 : index
      %c0_11 = arith.constant 0 : index
      %11 = vector.load %arg3[%c0_10, %c0_11] : memref<32x128xf32, #tpu.memory_space<vmem>>, vector<32x128xf32>
      %cst_12 = arith.constant dense<0.000000e+00> : vector<128x128xf32>
      %12 = tpu.matmul %10, %11, %cst_12 {dimension_numbers = #tpu.dot_dimension_numbers<[1], [0], [0], [1], [0, 0, 1, 1], [], []>} : vector<128x32xf32>, vector<32x128xf32>, vector<128x128xf32> -> vector<128x128xf32>
      %c0_13 = arith.constant 0 : index
      %c0_14 = arith.constant 0 : index
      %13 = vector.load %arg4[%c0_13, %c0_14] : memref<1x128xf32, #tpu.memory_space<vmem>>, vector<1x128xf32>
      %14 = vector.broadcast %13 : vector<1x128xf32> to vector<128x128xf32>
      %15 = arith.addf %12, %14 : vector<128x128xf32>
      %c0_15 = arith.constant 0 : index
      %c0_16 = arith.constant 0 : index
      %16 = vector.load %arg8[%c0_15, %c0_16] : memref<128x128xf32, #tpu.memory_space<vmem>>, vector<128x128xf32>
      tpu.vector_store %arg8[%c0_15, %c0_16], %15 {strides = array<i32>} : memref<128x128xf32, #tpu.memory_space<vmem>>, vector<128x128xf32>,
    } else {
    }
    %c0 = arith.constant 0 : index
    %c0_1 = arith.constant 0 : index
    %3 = vector.load %arg8[%c0, %c0_1] : memref<128x128xf32, #tpu.memory_space<vmem>>, vector<128x128xf32>
    %c0_2 = arith.constant 0 : index
    %c0_3 = arith.constant 0 : index
    %4 = vector.load %arg5[%c0_2, %c0_3] : memref<128x48xf32, #tpu.memory_space<vmem>>, vector<128x48xf32>
    %cst = arith.constant dense<0.000000e+00> : vector<128x48xf32>
    %5 = tpu.matmul %3, %4, %cst {dimension_numbers = #tpu.dot_dimension_numbers<[1], [0], [0], [1], [0, 0, 1, 1], [], []>} : vector<128x128xf32>, vector<128x48xf32>, vector<128x48xf32> -> vector<128x48xf32>
    %c0_4 = arith.constant 0 : index
    %c0_5 = arith.constant 0 : index
    %6 = vector.load %arg6[%c0_4, %c0_5] : memref<1x48xf32, #tpu.memory_space<vmem>>, vector<1x48xf32>
    %7 = vector.broadcast %6 : vector<1x48xf32> to vector<128x48xf32>
    %8 = arith.addf %5, %7 : vector<128x48xf32>
    %c0_6 = arith.constant 0 : index
    %c0_7 = arith.constant 0 : index
    %9 = vector.load %arg7[%c0_6, %c0_7] : memref<128x48xf32, #tpu.memory_space<vmem>>, vector<128x48xf32>
    tpu.vector_store %arg7[%c0_6, %c0_7], %8 {strides = array<i32>} : memref<128x48xf32, #tpu.memory_space<vmem>>, vector<128x48xf32>,
    return
  }
  func.func @transform_0(%arg0: i32, %arg1: i32) -> (i32, i32) {
    %c0_i32 = arith.constant 0 : i32
    %c0_i32_0 = arith.constant 0 : i32
    return %arg0, %c0_i32 : i32, i32
  }
  func.func @transform_1(%arg0: i32, %arg1: i32) -> (i32, i32) {
    %c0_i32 = arith.constant 0 : i32
    %c0_i32_0 = arith.constant 0 : i32
    %c0_i32_1 = arith.constant 0 : i32
    return %c0_i32, %c0_i32_0 : i32, i32
  }
  func.func @transform_2(%arg0: i32, %arg1: i32) -> (i32, i32) {
    %c0_i32 = arith.constant 0 : i32
    %c0_i32_0 = arith.constant 0 : i32
    %c0_i32_1 = arith.constant 0 : i32
    return %c0_i32, %c0_i32_0 : i32, i32
  }
  func.func @transform_3(%arg0: i32, %arg1: i32) -> (i32, i32) {
    %c0_i32 = arith.constant 0 : i32
    %c0_i32_0 = arith.constant 0 : i32
    return %c0_i32, %arg1 : i32, i32
  }
  func.func @transform_4(%arg0: i32, %arg1: i32) -> (i32, i32) {
    %c0_i32 = arith.constant 0 : i32
    %c0_i32_0 = arith.constant 0 : i32
    return %c0_i32, %arg1 : i32, i32
  }
  func.func @transform_5(%arg0: i32, %arg1: i32) -> (i32, i32) {
    %c0_i32 = arith.constant 0 : i32
    return %arg0, %arg1 : i32, i32
  }
}

module attributes {stable_mosaic.version = 11 : i64} {
  func.func @concat_models_kernel(%arg0: i32, %arg1: i32, %arg2: memref<128x32xf32, #tpu.memory_space<vmem>>, %arg3: memref<32x128xf32, #tpu.memory_space<vmem>>, %arg4: memref<1x128xf32, #tpu.memory_space<vmem>>, %arg5: memref<128x48xf32, #tpu.memory_space<vmem>>, %arg6: memref<1x48xf32, #tpu.memory_space<vmem>>, %arg7: memref<128x48xf32, #tpu.memory_space<vmem>>, %arg8: memref<128x128xf32, #tpu.memory_space<vmem>>) attributes {dimension_semantics = [#tpu.dimension_semantics<parallel>, #tpu.dimension_semantics<arbitrary>], iteration_bounds = array<i64: 2, 1>, scalar_prefetch = 0 : i64, scratch_operands = 1 : i64, tpu.core_type = #tpu.core_type<tc>, window_params = [{transform_indices = @transform_0, window_bounds = array<i64: 128, 32>}, {pipeline_mode = #tpu.pipeline_mode<synchronous>, transform_indices = @transform_1, window_bounds = array<i64: 32, 128>}, {pipeline_mode = #tpu.pipeline_mode<synchronous>, transform_indices = @transform_2, window_bounds = array<i64: 1, 128>}, {transform_indices = @transform_3, window_bounds = array<i64: 128, 48>}, {transform_indices = @transform_4, window_bounds = array<i64: 1, 48>}, {transform_indices = @transform_5, window_bounds = array<i64: 128, 48>}]} {
    %c0_i32 = arith.constant 0 : i32
    %0 = arith.cmpi eq, %arg1, %c0_i32 : i32
    %1 = arith.extui %0 : i1 to i32
    %c0_i32_0 = arith.constant 0 : i32
    %2 = arith.cmpi ne, %1, %c0_i32_0 : i32
    scf.if %2 {
      %c0_8 = arith.constant 0 : index
      %c0_9 = arith.constant 0 : index
      %10 = vector.load %arg2[%c0_8, %c0_9] : memref<128x32xf32, #tpu.memory_space<vmem>>, vector<128x32xf32>
      %c0_10 = arith.constant 0 : index
      %c0_11 = arith.constant 0 : index
      %11 = vector.load %arg3[%c0_10, %c0_11] : memref<32x128xf32, #tpu.memory_space<vmem>>, vector<32x128xf32>
      %cst_12 = arith.constant dense<0.000000e+00> : vector<128x128xf32>
      %12 = tpu.matmul %10, %11, %cst_12 {dimension_numbers = #tpu.dot_dimension_numbers<[1], [0], [0], [1], [0, 0, 1, 1], [], []>} : vector<128x32xf32>, vector<32x128xf32>, vector<128x128xf32> -> vector<128x128xf32>
      %c0_13 = arith.constant 0 : index
      %c0_14 = arith.constant 0 : index
      %13 = vector.load %arg4[%c0_13, %c0_14] : memref<1x128xf32, #tpu.memory_space<vmem>>, vector<1x128xf32>
      %14 = vector.broadcast %13 : vector<1x128xf32> to vector<128x128xf32>
      %15 = arith.addf %12, %14 : vector<128x128xf32>
      %c0_15 = arith.constant 0 : index
      %c0_16 = arith.constant 0 : index
      %16 = vector.load %arg8[%c0_15, %c0_16] : memref<128x128xf32, #tpu.memory_space<vmem>>, vector<128x128xf32>
      tpu.vector_store %arg8[%c0_15, %c0_16], %15 {strides = array<i32>} : memref<128x128xf32, #tpu.memory_space<vmem>>, vector<128x128xf32>,
    } else {
    }
    %c0 = arith.constant 0 : index
    %c0_1 = arith.constant 0 : index
    %3 = vector.load %arg8[%c0, %c0_1] : memref<128x128xf32, #tpu.memory_space<vmem>>, vector<128x128xf32>
    %c0_2 = arith.constant 0 : index
    %c0_3 = arith.constant 0 : index
    %4 = vector.load %arg5[%c0_2, %c0_3] : memref<128x48xf32, #tpu.memory_space<vmem>>, vector<128x48xf32>
    %cst = arith.constant dense<0.000000e+00> : vector<128x48xf32>
    %5 = tpu.matmul %3, %4, %cst {dimension_numbers = #tpu.dot_dimension_numbers<[1], [0], [0], [1], [0, 0, 1, 1], [], []>} : vector<128x128xf32>, vector<128x48xf32>, vector<128x48xf32> -> vector<128x48xf32>
    %c0_4 = arith.constant 0 : index
    %c0_5 = arith.constant 0 : index
    %6 = vector.load %arg6[%c0_4, %c0_5] : memref<1x48xf32, #tpu.memory_space<vmem>>, vector<1x48xf32>
    %7 = vector.broadcast %6 : vector<1x48xf32> to vector<128x48xf32>
    %8 = arith.addf %5, %7 : vector<128x48xf32>
    %c0_6 = arith.constant 0 : index
    %c0_7 = arith.constant 0 : index
    %9 = vector.load %arg7[%c0_6, %c0_7] : memref<128x48xf32, #tpu.memory_space<vmem>>, vector<128x48xf32>
    tpu.vector_store %arg7[%c0_6, %c0_7], %8 {strides = array<i32>} : memref<128x48xf32, #tpu.memory_space<vmem>>, vector<128x48xf32>,
    return
  }
  func.func @transform_0(%arg0: i32, %arg1: i32) -> (i32, i32) {
    %c0_i32 = arith.constant 0 : i32
    %c0_i32_0 = arith.constant 0 : i32
    return %arg0, %c0_i32 : i32, i32
  }
  func.func @transform_1(%arg0: i32, %arg1: i32) -> (i32, i32) {
    %c0_i32 = arith.constant 0 : i32
    %c0_i32_0 = arith.constant 0 : i32
    %c0_i32_1 = arith.constant 0 : i32
    return %c0_i32, %c0_i32_0 : i32, i32
  }
  func.func @transform_2(%arg0: i32, %arg1: i32) -> (i32, i32) {
    %c0_i32 = arith.constant 0 : i32
    %c0_i32_0 = arith.constant 0 : i32
    %c0_i32_1 = arith.constant 0 : i32
    return %c0_i32, %c0_i32_0 : i32, i32
  }
  func.func @transform_3(%arg0: i32, %arg1: i32) -> (i32, i32) {
    %c0_i32 = arith.constant 0 : i32
    %c0_i32_0 = arith.constant 0 : i32
    return %c0_i32, %arg1 : i32, i32
  }
  func.func @transform_4(%arg0: i32, %arg1: i32) -> (i32, i32) {
    %c0_i32 = arith.constant 0 : i32
    %c0_i32_0 = arith.constant 0 : i32
    return %c0_i32, %arg1 : i32, i32
  }
  func.func @transform_5(%arg0: i32, %arg1: i32) -> (i32, i32) {
    %c0_i32 = arith.constant 0 : i32
    return %arg0, %arg1 : i32, i32
  }
}

</mosaic_0001>

<bundles_post_ra>
// kernel: tpu_custom_call.1
= control target key start
LH: loop header
LB: loop body
LE: loop exit
PB: predicated region body
PF: predicated region fallthrough
CT: control target
= control target key end

     0   :  { %s1128_s18 = smov 0   ;;  %s1130_s19 = smov 0   ;;  %s1302_s0 = inlined_call_operand.vmem [shape: f32[256,32], index: 0, kind: input, shape index: {}]   ;;  %s1303_s1 = inlined_call_operand.vmem [shape: f32[32,128], index: 1, kind: input, shape index: {}]   ;;  %s1304_s2 = inlined_call_operand.vmem [shape: f32[1,128], index: 2, kind: input, shape index: {}]   ;;  %s1305_s3 = inlined_call_operand.vmem [shape: f32[128,48], index: 3, kind: input, shape index: {}]   ;;  %s1306_s4 = inlined_call_operand.vmem [shape: f32[1,48], index: 4, kind: input, shape index: {}]   ;;  %s1307_s5 = inlined_call_operand.vmem [shape: f32[256,48], index: 5, kind: output, shape index: {}]  }
   0x1   :  { %s1132_s20 = smov 0  }
   0x2 LB: > { %s27_s21 = sadd.s32 1, %s1092_s19  ;;  %p829_p0 = scmp.ge.s32.totalorder %s1096_s20, 1  ;;  %s1096_s20 = sphi %s1132_s20, %s15_s20   ;;  %s1092_s19 = sphi %s1130_s19, %s1309_s19   ;;  %s1088_s18 = sphi %s1128_s18, %s1308_s18  }
   0x3   : > { %p29_p1 = scmp.ge.s32.totalorder %s27_s21, 2  ;;  %p219_p2 = scmp.lt.s32.totalorder %s1096_s20, 3 }
   0x5   : > { %s1311_s21 = smov (%p29_p1, %s27_s21), 0  ;;  %p220_p3 = pnand %p829_p0, %p219_p2 }
   0x6   : > { %v299_v0 = vld [vmem:[%s1303_s1] sm:$0xff] (!%p220_p3)  ;;  %v300_v1 = vld [vmem:[%s1303_s1 + $0x8] sm:$0xff] (!%p220_p3)  ;;  %v301_v2 = vld [vmem:[%s1303_s1 + $0x10] sm:$0xff] (!%p220_p3)  ;;  %s830_s28 = sshll.u32 (!%p220_p3), %s1088_s18, 4  ;;  %vm310_vm0 = vcmask (!%p220_p3), 261120   ;;  %vm704_vm1 = vcmask (!%p220_p3), 392192  }
   0x7   : > { %223 = sbr.rel (%p220_p3) target bundleno = 479 (0x1df), region = 40  ;;  %v994_v3 = vpack.c.bf16 (!%p220_p3), %v300_v1, %v299_v0  ;;  %v302_v4 = vld [vmem:[%s1303_s1 + $0x18] sm:$0xff] (!%p220_p3)  ;;  %p258_p4 = scmp.lt.s32.totalorder (!%p220_p3), %s830_s28, 31  ;;  %v536_v5 = vld [vmem:[%s1305_s3] sm:$0xff] (!%p220_p3)  ;;  %v537_v6 = vld [vmem:[%s1305_s3 + $0x8] sm:$0xff] (!%p220_p3) }
   0x8   : > { %v998_v7 = vpack.c.bf16 (!%p220_p3), %v302_v4, %v301_v2  ;;  %v1002_v8 = vpack.c.bf16 (!%p220_p3), %v537_v6, %v536_v5  ;;  %v538_v9 = vld [vmem:[%s1305_s3 + $0x10] sm:$0xff] (!%p220_p3)  ;;  %v539_v10 = vld [vmem:[%s1305_s3 + $0x18] sm:$0xff] (!%p220_p3)  ;;  %v540_v12 = vld [vmem:[%s1305_s3 + $0x20] sm:$0xff] (!%p220_p3) }
   0x9   : > { %995 = vmatprep.subr.bf16.mxu0 (!%p220_p3), %v994_v3  ;;  %v1006_v11 = vpack.c.bf16 (!%p220_p3), %v539_v10, %v538_v9  ;;  %v541_v13 = vld [vmem:[%s1305_s3 + $0x28] sm:$0xff] (!%p220_p3)  ;;  %v542_v18 = vld [vmem:[%s1305_s3 + $0x30] sm:$0xff] (!%p220_p3)  ;;  %v543_v19 = vld [vmem:[%s1305_s3 + $0x38] sm:$0xff] (!%p220_p3) }
   0xa   : > { %997 = vmatpush3.bf16.msra.mxu0 (!%p220_p3), %v994_v3  ;;  %1034 = vmatprep.subr.bf16.mxu1 (!%p220_p3), %v1002_v8  ;;  %v1010_v16 = vpack.c.bf16 (!%p220_p3), %v541_v13, %v540_v12  ;;  %v1014_v21 = vpack.c.bf16 (!%p220_p3), %v543_v19, %v542_v18  ;;  %v544_v23 = vld [vmem:[%s1305_s3 + $0x40] sm:$0xff] (!%p220_p3)  ;;  %v545_v24 = vld [vmem:[%s1305_s3 + $0x48] sm:$0xff] (!%p220_p3)  ;;  %v546_v28 = vld [vmem:[%s1305_s3 + $0x50] sm:$0xff] (!%p220_p3) }
   0xb   : > { %999 = vmatprep.subr.bf16.mxu0 (!%p220_p3), %v998_v7  ;;  %1042 = vmatpush3.bf16.msra.mxu1 (!%p220_p3), %v1002_v8  ;;  %v1018_v26 = vpack.c.bf16 (!%p220_p3), %v545_v24, %v544_v23  ;;  %v547_v29 = vld [vmem:[%s1305_s3 + $0x58] sm:$0xff] (!%p220_p3)  ;;  %v548_v33 = vld [vmem:[%s1305_s3 + $0x60] sm:$0xff] (!%p220_p3)  ;;  %v549_v34 = vld [vmem:[%s1305_s3 + $0x68] sm:$0xff] (!%p220_p3) }
   0xc   : > { %1035 = vmatprep.subr.bf16.mxu1 (!%p220_p3), %v1006_v11  ;;  %v1022_v31 = vpack.c.bf16 (!%p220_p3), %v547_v29, %v546_v28  ;;  %v1026_v36 = vpack.c.bf16 (!%p220_p3), %v549_v34, %v548_v33  ;;  %v550_v43 = vld [vmem:[%s1305_s3 + $0x70] sm:$0xff] (!%p220_p3)  ;;  %v551_v44 = vld [vmem:[%s1305_s3 + $0x78] sm:$0xff] (!%p220_p3)  ;;  %v834_v46 = vld [vmem:[%s1304_s2] ss:$0 sm:$0xff] (!%p220_p3) }
   0xd   : > { %v1030_v45 = vpack.c.bf16 (!%p220_p3), %v551_v44, %v550_v43 }
   0xe   : > { %s1313_s28 = smov (!%p258_p4, %s830_s28), 31  ;;  %1001 = vmatpush3.bf16.msra.mxu0 %v998_v7 }
   0xf   : > { %s831_s14 = sshll.u32 %s1313_s28, 3  ;;  %1003 = vmatprep.subr.bf16.mxu0 %v1002_v8  ;;  %1043 = vmatpush3.bf16.msra.mxu1 %v1006_v11 }
  0x10   : > { %s1184_s24 = scalar_lea.vmem %s1302_s0, %s831_s14  ;;  %1036 = vmatprep.subr.bf16.mxu1 %v1010_v16  ;;  %s1259_s7 = scalar_lea.vmem %s1307_s5, %s831_s14 }
  0x11   : > { %v283_v14 = vld [vmem:[%s1184_s24] sm:$0xff]  ;;  %v284_v15 = vld [vmem:[%s1184_s24 + $0x8] sm:$0xff]  ;;  %v285_v17 = vld [vmem:[%s1184_s24 + $0x10] sm:$0xff] }
  0x12   : > { %914 = vmatprep.mubr.msk.f32.mxu0 %vm310_vm0, %v283_v14  ;;  %v286_v20 = vld [vmem:[%s1184_s24 + $0x18] sm:$0xff]  ;;  %v287_v22 = vld [vmem:[%s1184_s24 + $0x20] sm:$0xff]  ;;  %v288_v25 = vld [vmem:[%s1184_s24 + $0x28] sm:$0xff] }
  0x13   : > { %915 = vmatmul.mubr.msk.f32.vlgmr.msra.gmra.mrb[0].mxu0 %vm310_vm0, %v284_v15  ;;  %1044 = vmatpush3.bf16.msra.mxu1 %v1010_v16  ;;  %v289_v27 = vld [vmem:[%s1184_s24 + $0x30] sm:$0xff]  ;;  %v290_v30 = vld [vmem:[%s1184_s24 + $0x38] sm:$0xff]  ;;  %v291_v32 = vld [vmem:[%s1184_s24 + $0x40] sm:$0xff] }
  0x14   : > { %917 = vmatprep.mubr.msk.f32.mxu0 %vm310_vm0, %v285_v17  ;;  %1005 = vmatpush3.bf16.msra.mxu0 %v1002_v8  ;;  %v292_v35 = vld [vmem:[%s1184_s24 + $0x48] sm:$0xff]  ;;  %v293_v37 = vld [vmem:[%s1184_s24 + $0x50] sm:$0xff]  ;;  %v294_v38 = vld [vmem:[%s1184_s24 + $0x58] sm:$0xff] }
  0x15   : > { %1007 = vmatprep.subr.bf16.mxu0 %v1006_v11  ;;  %1037 = vmatprep.subr.bf16.mxu1 %v1014_v21  ;;  %v295_v39 = vld [vmem:[%s1184_s24 + $0x60] sm:$0xff]  ;;  %v296_v40 = vld [vmem:[%s1184_s24 + $0x68] sm:$0xff]  ;;  %v297_v41 = vld [vmem:[%s1184_s24 + $0x70] sm:$0xff] }
  0x16   : > { %v298_v42 = vld [vmem:[%s1184_s24 + $0x78] sm:$0xff]  ;;  %v851_v15 = vld [vmem:[%s1306_s4] ss:$0 sm:$0xff] }
  0x17   : > { %918 = vmatmul.mubr.msk.f32.gmra.mrb[2].mxu0 %vm310_vm0, %v286_v20  ;;  %1045 = vmatpush3.bf16.msra.mxu1 %v1014_v21 }
  0x18   : > { %920 = vmatprep.mubr.msk.f32.mxu0 %vm310_vm0, %v287_v22  ;;  %1009 = vmatpush3.bf16.msra.mxu0 %v1006_v11 }
  0x19   : > { %1011 = vmatprep.subr.bf16.mxu0 %v1010_v16  ;;  %1038 = vmatprep.subr.bf16.mxu1 %v1018_v26 }
  0x1b   : > { %921 = vmatmul.mubr.msk.f32.gmra.mrb[4].mxu0 %vm310_vm0, %v288_v25  ;;  %1046 = vmatpush3.bf16.msra.mxu1 %v1018_v26 }
  0x1c   : > { %923 = vmatprep.mubr.msk.f32.mxu0 %vm310_vm0, %v289_v27  ;;  %1013 = vmatpush3.bf16.msra.mxu0 %v1010_v16 }
  0x1d   : > { %1015 = vmatprep.subr.bf16.mxu0 %v1014_v21  ;;  %1039 = vmatprep.subr.bf16.mxu1 %v1022_v31 }
  0x1f   : > { %924 = vmatmul.mubr.msk.f32.gmra.mrb[6].mxu0 %vm310_vm0, %v290_v30  ;;  %1047 = vmatpush3.bf16.msra.mxu1 %v1022_v31 }
  0x20   : > { %926 = vmatprep.mubr.msk.f32.mxu0 %vm310_vm0, %v291_v32  ;;  %1017 = vmatpush3.bf16.msra.mxu0 %v1014_v21 }
  0x21   : > { %1019 = vmatprep.subr.bf16.mxu0 %v1018_v26  ;;  %1040 = vmatprep.subr.bf16.mxu1 %v1026_v36 }
  0x23   : > { %927 = vmatmul.mubr.msk.f32.gmra.mrb[8].mxu0 %vm310_vm0, %v292_v35  ;;  %1048 = vmatpush3.bf16.msra.mxu1 %v1026_v36 }
  0x24   : > { %929 = vmatprep.mubr.msk.f32.mxu0 %vm310_vm0, %v293_v37  ;;  %1021 = vmatpush3.bf16.msra.mxu0 %v1018_v26 }
  0x25   : > { %1023 = vmatprep.subr.bf16.mxu0 %v1022_v31  ;;  %1041 = vmatprep.subr.bf16.mxu1 %v1030_v45 }
  0x27   : > { %930 = vmatmul.mubr.msk.f32.gmra.mrb[10].mxu0 %vm310_vm0, %v294_v38  ;;  %1049 = vmatpush3.bf16.msra.mxu1 %v1030_v45 }
  0x28   : > { %932 = vmatprep.mubr.msk.f32.mxu0 %vm310_vm0, %v295_v39  ;;  %1025 = vmatpush3.bf16.msra.mxu0 %v1022_v31 }
  0x29   : > { %1027 = vmatprep.subr.bf16.mxu0 %v1026_v36 }
  0x2b   : > { %933 = vmatmul.mubr.msk.f32.gmra.mrb[12].mxu0 %vm310_vm0, %v296_v40 }
  0x2c   : > { %935 = vmatprep.mubr.msk.f32.mxu0 %vm310_vm0, %v297_v41  ;;  %1029 = vmatpush3.bf16.msra.mxu0 %v1026_v36 }
  0x2d   : > { %1031 = vmatprep.subr.bf16.mxu0 %v1030_v45 }
  0x2f   : > { %936 = vmatmul.mubr.msk.f32.gmra.mrb[14].mxu0 %vm310_vm0, %v298_v42 }
  0x30   : > { %1033 = vmatpush3.bf16.msra.mxu0 %v1030_v45 }
  0xe6   : > { %v916_v47 = vpop.f32.mrb[0].mxu0 }
  0xe7   : > { %v425_v48 = vpop.f32.mrb[1].mxu0  ;;  %v431_v50 = vadd.f32 %v916_v47, %v834_v46 }
  0xe8   : > { %v426_v49 = vadd.f32 %v834_v46, %v425_v48 }
  0xea   : > { %v919_v51 = vpop.f32.mrb[2].mxu0  ;;  %970 = vmatprep.mubr.f32.mxu0 %v426_v49 }
  0xeb   : > { %v435_v52 = vpop.f32.mrb[3].mxu0  ;;  %971 = vmatmul.mubr.f32.vlgmr.msra.gmra.mrb[16].mxu0 %v431_v50  ;;  %v441_v54 = vadd.f32 %v919_v51, %v834_v46 }
  0xec   : > { %v436_v53 = vadd.f32 %v834_v46, %v435_v52 }
  0xee   : > { %v922_v55 = vpop.f32.mrb[4].mxu0  ;;  %973 = vmatprep.mubr.f32.mxu0 %v436_v53 }
  0xef   : > { %v445_v56 = vpop.f32.mrb[5].mxu0  ;;  %974 = vmatmul.mubr.f32.gmra.mrb[18].mxu0 %v441_v54  ;;  %v451_v58 = vadd.f32 %v922_v55, %v834_v46 }
  0xf0   : > { %v446_v57 = vadd.f32 %v834_v46, %v445_v56 }
  0xf2   : > { %v925_v59 = vpop.f32.mrb[6].mxu0  ;;  %976 = vmatprep.mubr.f32.mxu0 %v446_v57 }
  0xf3   : > { %v455_v60 = vpop.f32.mrb[7].mxu0  ;;  %977 = vmatmul.mubr.f32.gmra.mrb[20].mxu0 %v451_v58  ;;  %v461_v62 = vadd.f32 %v925_v59, %v834_v46 }
  0xf4   : > { %v456_v61 = vadd.f32 %v834_v46, %v455_v60 }
  0xf6   : > { %v928_v63 = vpop.f32.mrb[8].mxu0  ;;  %979 = vmatprep.mubr.f32.mxu1 %v456_v61 }
  0xf7   : > { %v465_v0 = vpop.f32.mrb[9].mxu0  ;;  %980 = vmatmul.mubr.f32.vlgmr.msra.gmra.mrb[0].mxu1 %v461_v62  ;;  %v471_v2 = vadd.f32 %v928_v63, %v834_v46 }
  0xf8   : > { %v466_v1 = vadd.f32 %v834_v46, %v465_v0 }
  0xfa   : > { %v931_v3 = vpop.f32.mrb[10].mxu0  ;;  %982 = vmatprep.mubr.f32.mxu1 %v466_v1 }
  0xfb   : > { %v475_v4 = vpop.f32.mrb[11].mxu0  ;;  %983 = vmatmul.mubr.f32.gmra.mrb[2].mxu1 %v471_v2  ;;  %v481_v6 = vadd.f32 %v931_v3, %v834_v46 }
  0xfc   : > { %v476_v5 = vadd.f32 %v834_v46, %v475_v4 }
  0xfe   : > { %v934_v7 = vpop.f32.mrb[12].mxu0  ;;  %985 = vmatprep.mubr.f32.mxu1 %v476_v5 }
  0xff   : > { %v485_v8 = vpop.f32.mrb[13].mxu0  ;;  %986 = vmatmul.mubr.f32.gmra.mrb[4].mxu1 %v481_v6  ;;  %v491_v10 = vadd.f32 %v934_v7, %v834_v46 }
 0x100   : > { %v486_v9 = vadd.f32 %v834_v46, %v485_v8 }
 0x102   : > { %v937_v11 = vpop.f32.mrb[14].mxu0  ;;  %988 = vmatprep.mubr.f32.mxu1 %v486_v9 }
 0x103   : > { %v495_v12 = vpop.f32.mrb[15].mxu0  ;;  %989 = vmatmul.mubr.f32.gmra.mrb[6].mxu1 %v491_v10  ;;  %v501_v14 = vadd.f32 %v937_v11, %v834_v46 }
 0x104   : > { %v496_v13 = vadd.f32 %v834_v46, %v495_v12 }
 0x106   : > { %991 = vmatprep.mubr.f32.mxu1 %v496_v13 }
 0x107   : > { %992 = vmatmul.mubr.f32.gmra.mrb[8].mxu1 %v501_v14 }
 0x1be   : > { %v972_v16 = vpop.f32.mrb[16].mxu0 }
 0x1bf   : > { %v631_v17 = vadd.f32 %v972_v16, %v851_v15  ;;  %v625_v18 = vpop.f32.mrb[17].mxu0 }
 0x1c0   : > { %v626_v19 = vadd.f32 %v851_v15, %v625_v18 }
 0x1c1   : > { %706 = vst.msk [vmem:[%s1259_s7 + $0x8] sm:$0xff] %vm704_vm1, %v631_v17 }
 0x1c2   : > { %705 = vst.msk [vmem:[%s1259_s7] sm:$0xff] %vm704_vm1, %v626_v19  ;;  %v975_v20 = vpop.f32.mrb[18].mxu0 }
 0x1c3   : > { %v641_v21 = vadd.f32 %v975_v20, %v851_v15  ;;  %v635_v22 = vpop.f32.mrb[19].mxu0 }
 0x1c4   : > { %v636_v23 = vadd.f32 %v851_v15, %v635_v22 }
 0x1c5   : > { %708 = vst.msk [vmem:[%s1259_s7 + $0x18] sm:$0xff] %vm704_vm1, %v641_v21 }
 0x1c6   : > { %707 = vst.msk [vmem:[%s1259_s7 + $0x10] sm:$0xff] %vm704_vm1, %v636_v23  ;;  %v978_v24 = vpop.f32.mrb[20].mxu0 }
 0x1c7   : > { %v651_v25 = vadd.f32 %v978_v24, %v851_v15  ;;  %v645_v26 = vpop.f32.mrb[21].mxu0 }
 0x1c8   : > { %v646_v27 = vadd.f32 %v851_v15, %v645_v26 }
 0x1c9   : > { %710 = vst.msk [vmem:[%s1259_s7 + $0x28] sm:$0xff] %vm704_vm1, %v651_v25 }
 0x1ca   : > { %709 = vst.msk [vmem:[%s1259_s7 + $0x20] sm:$0xff] %vm704_vm1, %v646_v27  ;;  %v981_v28 = vpop.f32.mrb[0].mxu1 }
 0x1cb   : > { %v661_v29 = vadd.f32 %v981_v28, %v851_v15  ;;  %v655_v30 = vpop.f32.mrb[1].mxu1 }
 0x1cc   : > { %v656_v31 = vadd.f32 %v851_v15, %v655_v30 }
 0x1cd   : > { %712 = vst.msk [vmem:[%s1259_s7 + $0x38] sm:$0xff] %vm704_vm1, %v661_v29 }
 0x1ce   : > { %711 = vst.msk [vmem:[%s1259_s7 + $0x30] sm:$0xff] %vm704_vm1, %v656_v31  ;;  %v984_v32 = vpop.f32.mrb[2].mxu1 }
 0x1cf   : > { %v671_v33 = vadd.f32 %v984_v32, %v851_v15  ;;  %v665_v34 = vpop.f32.mrb[3].mxu1 }
 0x1d0   : > { %v666_v35 = vadd.f32 %v851_v15, %v665_v34 }
 0x1d1   : > { %714 = vst.msk [vmem:[%s1259_s7 + $0x48] sm:$0xff] %vm704_vm1, %v671_v33 }
 0x1d2   : > { %713 = vst.msk [vmem:[%s1259_s7 + $0x40] sm:$0xff] %vm704_vm1, %v666_v35  ;;  %v987_v36 = vpop.f32.mrb[4].mxu1 }
 0x1d3   : > { %v681_v37 = vadd.f32 %v987_v36, %v851_v15  ;;  %v675_v38 = vpop.f32.mrb[5].mxu1 }
 0x1d4   : > { %v676_v39 = vadd.f32 %v851_v15, %v675_v38 }
 0x1d5   : > { %716 = vst.msk [vmem:[%s1259_s7 + $0x58] sm:$0xff] %vm704_vm1, %v681_v37 }
 0x1d6   : > { %715 = vst.msk [vmem:[%s1259_s7 + $0x50] sm:$0xff] %vm704_vm1, %v676_v39  ;;  %v990_v40 = vpop.f32.mrb[6].mxu1 }
 0x1d7   : > { %v691_v41 = vadd.f32 %v990_v40, %v851_v15  ;;  %v685_v42 = vpop.f32.mrb[7].mxu1 }
 0x1d8   : > { %v686_v43 = vadd.f32 %v851_v15, %v685_v42 }
 0x1d9   : > { %718 = vst.msk [vmem:[%s1259_s7 + $0x68] sm:$0xff] %vm704_vm1, %v691_v41 }
 0x1da   : > { %717 = vst.msk [vmem:[%s1259_s7 + $0x60] sm:$0xff] %vm704_vm1, %v686_v43  ;;  %v993_v44 = vpop.f32.mrb[8].mxu1 }
 0x1db   : > { %v701_v45 = vadd.f32 %v993_v44, %v851_v15  ;;  %v695_v46 = vpop.f32.mrb[9].mxu1 }
 0x1dc   : > { %v696_v47 = vadd.f32 %v851_v15, %v695_v46 }
 0x1dd   : > { %720 = vst.msk [vmem:[%s1259_s7 + $0x78] sm:$0xff] %vm704_vm1, %v701_v45 }
 0x1de   : > { %719 = vst.msk [vmem:[%s1259_s7 + $0x70] sm:$0xff] %vm704_vm1, %v696_v47 }
 0x1df PF: > { %s15_s20 = sadd.s32 1, %s1096_s20   ;;  %s1308_s18 = smov %s1092_s19 }
 0x1e0   : > { %p12_p5 = scmp.ge.s32.totalorder %s15_s20, 4   ;;  %s1309_s19 = smov %s1311_s21 }
 0x1e2   :  { %14 = sbr.rel (!%p12_p5) target bundleno = 2 (0x2), region = 80 }

// kernel: tpu_custom_call.1
= control target key start
LH: loop header
LB: loop body
LE: loop exit
PB: predicated region body
PF: predicated region fallthrough
CT: control target
= control target key end

     0   :  { %s1128_s18 = smov 0   ;;  %s1130_s19 = smov 0   ;;  %s1302_s0 = inlined_call_operand.vmem [shape: f32[256,32], index: 0, kind: input, shape index: {}]   ;;  %s1303_s1 = inlined_call_operand.vmem [shape: f32[32,128], index: 1, kind: input, shape index: {}]   ;;  %s1304_s2 = inlined_call_operand.vmem [shape: f32[1,128], index: 2, kind: input, shape index: {}]   ;;  %s1305_s3 = inlined_call_operand.vmem [shape: f32[128,48], index: 3, kind: input, shape index: {}]   ;;  %s1306_s4 = inlined_call_operand.vmem [shape: f32[1,48], index: 4, kind: input, shape index: {}]   ;;  %s1307_s5 = inlined_call_operand.vmem [shape: f32[256,48], index: 5, kind: output, shape index: {}]  }
   0x1   :  { %s1132_s20 = smov 0  }
   0x2 LB: > { %s27_s21 = sadd.s32 1, %s1092_s19  ;;  %p829_p0 = scmp.ge.s32.totalorder %s1096_s20, 1  ;;  %s1096_s20 = sphi %s1132_s20, %s15_s20   ;;  %s1092_s19 = sphi %s1130_s19, %s1309_s19   ;;  %s1088_s18 = sphi %s1128_s18, %s1308_s18  }
   0x3   : > { %p29_p1 = scmp.ge.s32.totalorder %s27_s21, 2  ;;  %p219_p2 = scmp.lt.s32.totalorder %s1096_s20, 3 }
   0x5   : > { %s1311_s21 = smov (%p29_p1, %s27_s21), 0  ;;  %p220_p3 = pnand %p829_p0, %p219_p2 }
   0x6   : > { %v299_v0 = vld [vmem:[%s1303_s1] sm:$0xff] (!%p220_p3)  ;;  %v300_v1 = vld [vmem:[%s1303_s1 + $0x8] sm:$0xff] (!%p220_p3)  ;;  %v301_v2 = vld [vmem:[%s1303_s1 + $0x10] sm:$0xff] (!%p220_p3)  ;;  %s830_s28 = sshll.u32 (!%p220_p3), %s1088_s18, 4  ;;  %vm310_vm0 = vcmask (!%p220_p3), 261120   ;;  %vm704_vm1 = vcmask (!%p220_p3), 392192  }
   0x7   : > { %223 = sbr.rel (%p220_p3) target bundleno = 479 (0x1df), region = 40  ;;  %v994_v3 = vpack.c.bf16 (!%p220_p3), %v300_v1, %v299_v0  ;;  %v302_v4 = vld [vmem:[%s1303_s1 + $0x18] sm:$0xff] (!%p220_p3)  ;;  %p258_p4 = scmp.lt.s32.totalorder (!%p220_p3), %s830_s28, 31  ;;  %v536_v5 = vld [vmem:[%s1305_s3] sm:$0xff] (!%p220_p3)  ;;  %v537_v6 = vld [vmem:[%s1305_s3 + $0x8] sm:$0xff] (!%p220_p3) }
   0x8   : > { %v998_v7 = vpack.c.bf16 (!%p220_p3), %v302_v4, %v301_v2  ;;  %v1002_v8 = vpack.c.bf16 (!%p220_p3), %v537_v6, %v536_v5  ;;  %v538_v9 = vld [vmem:[%s1305_s3 + $0x10] sm:$0xff] (!%p220_p3)  ;;  %v539_v10 = vld [vmem:[%s1305_s3 + $0x18] sm:$0xff] (!%p220_p3)  ;;  %v540_v12 = vld [vmem:[%s1305_s3 + $0x20] sm:$0xff] (!%p220_p3) }
   0x9   : > { %995 = vmatprep.subr.bf16.mxu0 (!%p220_p3), %v994_v3  ;;  %v1006_v11 = vpack.c.bf16 (!%p220_p3), %v539_v10, %v538_v9  ;;  %v541_v13 = vld [vmem:[%s1305_s3 + $0x28] sm:$0xff] (!%p220_p3)  ;;  %v542_v18 = vld [vmem:[%s1305_s3 + $0x30] sm:$0xff] (!%p220_p3)  ;;  %v543_v19 = vld [vmem:[%s1305_s3 + $0x38] sm:$0xff] (!%p220_p3) }
   0xa   : > { %997 = vmatpush3.bf16.msra.mxu0 (!%p220_p3), %v994_v3  ;;  %1034 = vmatprep.subr.bf16.mxu1 (!%p220_p3), %v1002_v8  ;;  %v1010_v16 = vpack.c.bf16 (!%p220_p3), %v541_v13, %v540_v12  ;;  %v1014_v21 = vpack.c.bf16 (!%p220_p3), %v543_v19, %v542_v18  ;;  %v544_v23 = vld [vmem:[%s1305_s3 + $0x40] sm:$0xff] (!%p220_p3)  ;;  %v545_v24 = vld [vmem:[%s1305_s3 + $0x48] sm:$0xff] (!%p220_p3)  ;;  %v546_v28 = vld [vmem:[%s1305_s3 + $0x50] sm:$0xff] (!%p220_p3) }
   0xb   : > { %999 = vmatprep.subr.bf16.mxu0 (!%p220_p3), %v998_v7  ;;  %1042 = vmatpush3.bf16.msra.mxu1 (!%p220_p3), %v1002_v8  ;;  %v1018_v26 = vpack.c.bf16 (!%p220_p3), %v545_v24, %v544_v23  ;;  %v547_v29 = vld [vmem:[%s1305_s3 + $0x58] sm:$0xff] (!%p220_p3)  ;;  %v548_v33 = vld [vmem:[%s1305_s3 + $0x60] sm:$0xff] (!%p220_p3)  ;;  %v549_v34 = vld [vmem:[%s1305_s3 + $0x68] sm:$0xff] (!%p220_p3) }
   0xc   : > { %1035 = vmatprep.subr.bf16.mxu1 (!%p220_p3), %v1006_v11  ;;  %v1022_v31 = vpack.c.bf16 (!%p220_p3), %v547_v29, %v546_v28  ;;  %v1026_v36 = vpack.c.bf16 (!%p220_p3), %v549_v34, %v548_v33  ;;  %v550_v43 = vld [vmem:[%s1305_s3 + $0x70] sm:$0xff] (!%p220_p3)  ;;  %v551_v44 = vld [vmem:[%s1305_s3 + $0x78] sm:$0xff] (!%p220_p3)  ;;  %v834_v46 = vld [vmem:[%s1304_s2] ss:$0 sm:$0xff] (!%p220_p3) }
   0xd   : > { %v1030_v45 = vpack.c.bf16 (!%p220_p3), %v551_v44, %v550_v43 }
   0xe   : > { %s1313_s28 = smov (!%p258_p4, %s830_s28), 31  ;;  %1001 = vmatpush3.bf16.msra.mxu0 %v998_v7 }
   0xf   : > { %s831_s14 = sshll.u32 %s1313_s28, 3  ;;  %1003 = vmatprep.subr.bf16.mxu0 %v1002_v8  ;;  %1043 = vmatpush3.bf16.msra.mxu1 %v1006_v11 }
  0x10   : > { %s1184_s24 = scalar_lea.vmem %s1302_s0, %s831_s14  ;;  %1036 = vmatprep.subr.bf16.mxu1 %v1010_v16  ;;  %s1259_s7 = scalar_lea.vmem %s1307_s5, %s831_s14 }
  0x11   : > { %v283_v14 = vld [vmem:[%s1184_s24] sm:$0xff]  ;;  %v284_v15 = vld [vmem:[%s1184_s24 + $0x8] sm:$0xff]  ;;  %v285_v17 = vld [vmem:[%s1184_s24 + $0x10] sm:$0xff] }
  0x12   : > { %914 = vmatprep.mubr.msk.f32.mxu0 %vm310_vm0, %v283_v14  ;;  %v286_v20 = vld [vmem:[%s1184_s24 + $0x18] sm:$0xff]  ;;  %v287_v22 = vld [vmem:[%s1184_s24 + $0x20] sm:$0xff]  ;;  %v288_v25 = vld [vmem:[%s1184_s24 + $0x28] sm:$0xff] }
  0x13   : > { %915 = vmatmul.mubr.msk.f32.vlgmr.msra.gmra.mrb[0].mxu0 %vm310_vm0, %v284_v15  ;;  %1044 = vmatpush3.bf16.msra.mxu1 %v1010_v16  ;;  %v289_v27 = vld [vmem:[%s1184_s24 + $0x30] sm:$0xff]  ;;  %v290_v30 = vld [vmem:[%s1184_s24 + $0x38] sm:$0xff]  ;;  %v291_v32 = vld [vmem:[%s1184_s24 + $0x40] sm:$0xff] }
  0x14   : > { %917 = vmatprep.mubr.msk.f32.mxu0 %vm310_vm0, %v285_v17  ;;  %1005 = vmatpush3.bf16.msra.mxu0 %v1002_v8  ;;  %v292_v35 = vld [vmem:[%s1184_s24 + $0x48] sm:$0xff]  ;;  %v293_v37 = vld [vmem:[%s1184_s24 + $0x50] sm:$0xff]  ;;  %v294_v38 = vld [vmem:[%s1184_s24 + $0x58] sm:$0xff] }
  0x15   : > { %1007 = vmatprep.subr.bf16.mxu0 %v1006_v11  ;;  %1037 = vmatprep.subr.bf16.mxu1 %v1014_v21  ;;  %v295_v39 = vld [vmem:[%s1184_s24 + $0x60] sm:$0xff]  ;;  %v296_v40 = vld [vmem:[%s1184_s24 + $0x68] sm:$0xff]  ;;  %v297_v41 = vld [vmem:[%s1184_s24 + $0x70] sm:$0xff] }
  0x16   : > { %v298_v42 = vld [vmem:[%s1184_s24 + $0x78] sm:$0xff]  ;;  %v851_v15 = vld [vmem:[%s1306_s4] ss:$0 sm:$0xff] }
  0x17   : > { %918 = vmatmul.mubr.msk.f32.gmra.mrb[2].mxu0 %vm310_vm0, %v286_v20  ;;  %1045 = vmatpush3.bf16.msra.mxu1 %v1014_v21 }
  0x18   : > { %920 = vmatprep.mubr.msk.f32.mxu0 %vm310_vm0, %v287_v22  ;;  %1009 = vmatpush3.bf16.msra.mxu0 %v1006_v11 }
  0x19   : > { %1011 = vmatprep.subr.bf16.mxu0 %v1010_v16  ;;  %1038 = vmatprep.subr.bf16.mxu1 %v1018_v26 }
  0x1b   : > { %921 = vmatmul.mubr.msk.f32.gmra.mrb[4].mxu0 %vm310_vm0, %v288_v25  ;;  %1046 = vmatpush3.bf16.msra.mxu1 %v1018_v26 }
  0x1c   : > { %923 = vmatprep.mubr.msk.f32.mxu0 %vm310_vm0, %v289_v27  ;;  %1013 = vmatpush3.bf16.msra.mxu0 %v1010_v16 }
  0x1d   : > { %1015 = vmatprep.subr.bf16.mxu0 %v1014_v21  ;;  %1039 = vmatprep.subr.bf16.mxu1 %v1022_v31 }
  0x1f   : > { %924 = vmatmul.mubr.msk.f32.gmra.mrb[6].mxu0 %vm310_vm0, %v290_v30  ;;  %1047 = vmatpush3.bf16.msra.mxu1 %v1022_v31 }
  0x20   : > { %926 = vmatprep.mubr.msk.f32.mxu0 %vm310_vm0, %v291_v32  ;;  %1017 = vmatpush3.bf16.msra.mxu0 %v1014_v21 }
  0x21   : > { %1019 = vmatprep.subr.bf16.mxu0 %v1018_v26  ;;  %1040 = vmatprep.subr.bf16.mxu1 %v1026_v36 }
  0x23   : > { %927 = vmatmul.mubr.msk.f32.gmra.mrb[8].mxu0 %vm310_vm0, %v292_v35  ;;  %1048 = vmatpush3.bf16.msra.mxu1 %v1026_v36 }
  0x24   : > { %929 = vmatprep.mubr.msk.f32.mxu0 %vm310_vm0, %v293_v37  ;;  %1021 = vmatpush3.bf16.msra.mxu0 %v1018_v26 }
  0x25   : > { %1023 = vmatprep.subr.bf16.mxu0 %v1022_v31  ;;  %1041 = vmatprep.subr.bf16.mxu1 %v1030_v45 }
  0x27   : > { %930 = vmatmul.mubr.msk.f32.gmra.mrb[10].mxu0 %vm310_vm0, %v294_v38  ;;  %1049 = vmatpush3.bf16.msra.mxu1 %v1030_v45 }
  0x28   : > { %932 = vmatprep.mubr.msk.f32.mxu0 %vm310_vm0, %v295_v39  ;;  %1025 = vmatpush3.bf16.msra.mxu0 %v1022_v31 }
  0x29   : > { %1027 = vmatprep.subr.bf16.mxu0 %v1026_v36 }
  0x2b   : > { %933 = vmatmul.mubr.msk.f32.gmra.mrb[12].mxu0 %vm310_vm0, %v296_v40 }
  0x2c   : > { %935 = vmatprep.mubr.msk.f32.mxu0 %vm310_vm0, %v297_v41  ;;  %1029 = vmatpush3.bf16.msra.mxu0 %v1026_v36 }
  0x2d   : > { %1031 = vmatprep.subr.bf16.mxu0 %v1030_v45 }
  0x2f   : > { %936 = vmatmul.mubr.msk.f32.gmra.mrb[14].mxu0 %vm310_vm0, %v298_v42 }
  0x30   : > { %1033 = vmatpush3.bf16.msra.mxu0 %v1030_v45 }
  0xe6   : > { %v916_v47 = vpop.f32.mrb[0].mxu0 }
  0xe7   : > { %v425_v48 = vpop.f32.mrb[1].mxu0  ;;  %v431_v50 = vadd.f32 %v916_v47, %v834_v46 }
  0xe8   : > { %v426_v49 = vadd.f32 %v834_v46, %v425_v48 }
  0xea   : > { %v919_v51 = vpop.f32.mrb[2].mxu0  ;;  %970 = vmatprep.mubr.f32.mxu0 %v426_v49 }
  0xeb   : > { %v435_v52 = vpop.f32.mrb[3].mxu0  ;;  %971 = vmatmul.mubr.f32.vlgmr.msra.gmra.mrb[16].mxu0 %v431_v50  ;;  %v441_v54 = vadd.f32 %v919_v51, %v834_v46 }
  0xec   : > { %v436_v53 = vadd.f32 %v834_v46, %v435_v52 }
  0xee   : > { %v922_v55 = vpop.f32.mrb[4].mxu0  ;;  %973 = vmatprep.mubr.f32.mxu0 %v436_v53 }
  0xef   : > { %v445_v56 = vpop.f32.mrb[5].mxu0  ;;  %974 = vmatmul.mubr.f32.gmra.mrb[18].mxu0 %v441_v54  ;;  %v451_v58 = vadd.f32 %v922_v55, %v834_v46 }
  0xf0   : > { %v446_v57 = vadd.f32 %v834_v46, %v445_v56 }
  0xf2   : > { %v925_v59 = vpop.f32.mrb[6].mxu0  ;;  %976 = vmatprep.mubr.f32.mxu0 %v446_v57 }
  0xf3   : > { %v455_v60 = vpop.f32.mrb[7].mxu0  ;;  %977 = vmatmul.mubr.f32.gmra.mrb[20].mxu0 %v451_v58  ;;  %v461_v62 = vadd.f32 %v925_v59, %v834_v46 }
  0xf4   : > { %v456_v61 = vadd.f32 %v834_v46, %v455_v60 }
  0xf6   : > { %v928_v63 = vpop.f32.mrb[8].mxu0  ;;  %979 = vmatprep.mubr.f32.mxu1 %v456_v61 }
  0xf7   : > { %v465_v0 = vpop.f32.mrb[9].mxu0  ;;  %980 = vmatmul.mubr.f32.vlgmr.msra.gmra.mrb[0].mxu1 %v461_v62  ;;  %v471_v2 = vadd.f32 %v928_v63, %v834_v46 }
  0xf8   : > { %v466_v1 = vadd.f32 %v834_v46, %v465_v0 }
  0xfa   : > { %v931_v3 = vpop.f32.mrb[10].mxu0  ;;  %982 = vmatprep.mubr.f32.mxu1 %v466_v1 }
  0xfb   : > { %v475_v4 = vpop.f32.mrb[11].mxu0  ;;  %983 = vmatmul.mubr.f32.gmra.mrb[2].mxu1 %v471_v2  ;;  %v481_v6 = vadd.f32 %v931_v3, %v834_v46 }
  0xfc   : > { %v476_v5 = vadd.f32 %v834_v46, %v475_v4 }
  0xfe   : > { %v934_v7 = vpop.f32.mrb[12].mxu0  ;;  %985 = vmatprep.mubr.f32.mxu1 %v476_v5 }
  0xff   : > { %v485_v8 = vpop.f32.mrb[13].mxu0  ;;  %986 = vmatmul.mubr.f32.gmra.mrb[4].mxu1 %v481_v6  ;;  %v491_v10 = vadd.f32 %v934_v7, %v834_v46 }
 0x100   : > { %v486_v9 = vadd.f32 %v834_v46, %v485_v8 }
 0x102   : > { %v937_v11 = vpop.f32.mrb[14].mxu0  ;;  %988 = vmatprep.mubr.f32.mxu1 %v486_v9 }
 0x103   : > { %v495_v12 = vpop.f32.mrb[15].mxu0  ;;  %989 = vmatmul.mubr.f32.gmra.mrb[6].mxu1 %v491_v10  ;;  %v501_v14 = vadd.f32 %v937_v11, %v834_v46 }
 0x104   : > { %v496_v13 = vadd.f32 %v834_v46, %v495_v12 }
 0x106   : > { %991 = vmatprep.mubr.f32.mxu1 %v496_v13 }
 0x107   : > { %992 = vmatmul.mubr.f32.gmra.mrb[8].mxu1 %v501_v14 }
 0x1be   : > { %v972_v16 = vpop.f32.mrb[16].mxu0 }
 0x1bf   : > { %v631_v17 = vadd.f32 %v972_v16, %v851_v15  ;;  %v625_v18 = vpop.f32.mrb[17].mxu0 }
 0x1c0   : > { %v626_v19 = vadd.f32 %v851_v15, %v625_v18 }
 0x1c1   : > { %706 = vst.msk [vmem:[%s1259_s7 + $0x8] sm:$0xff] %vm704_vm1, %v631_v17 }
 0x1c2   : > { %705 = vst.msk [vmem:[%s1259_s7] sm:$0xff] %vm704_vm1, %v626_v19  ;;  %v975_v20 = vpop.f32.mrb[18].mxu0 }
 0x1c3   : > { %v641_v21 = vadd.f32 %v975_v20, %v851_v15  ;;  %v635_v22 = vpop.f32.mrb[19].mxu0 }
 0x1c4   : > { %v636_v23 = vadd.f32 %v851_v15, %v635_v22 }
 0x1c5   : > { %708 = vst.msk [vmem:[%s1259_s7 + $0x18] sm:$0xff] %vm704_vm1, %v641_v21 }
 0x1c6   : > { %707 = vst.msk [vmem:[%s1259_s7 + $0x10] sm:$0xff] %vm704_vm1, %v636_v23  ;;  %v978_v24 = vpop.f32.mrb[20].mxu0 }
 0x1c7   : > { %v651_v25 = vadd.f32 %v978_v24, %v851_v15  ;;  %v645_v26 = vpop.f32.mrb[21].mxu0 }
 0x1c8   : > { %v646_v27 = vadd.f32 %v851_v15, %v645_v26 }
 0x1c9   : > { %710 = vst.msk [vmem:[%s1259_s7 + $0x28] sm:$0xff] %vm704_vm1, %v651_v25 }
 0x1ca   : > { %709 = vst.msk [vmem:[%s1259_s7 + $0x20] sm:$0xff] %vm704_vm1, %v646_v27  ;;  %v981_v28 = vpop.f32.mrb[0].mxu1 }
 0x1cb   : > { %v661_v29 = vadd.f32 %v981_v28, %v851_v15  ;;  %v655_v30 = vpop.f32.mrb[1].mxu1 }
 0x1cc   : > { %v656_v31 = vadd.f32 %v851_v15, %v655_v30 }
 0x1cd   : > { %712 = vst.msk [vmem:[%s1259_s7 + $0x38] sm:$0xff] %vm704_vm1, %v661_v29 }
 0x1ce   : > { %711 = vst.msk [vmem:[%s1259_s7 + $0x30] sm:$0xff] %vm704_vm1, %v656_v31  ;;  %v984_v32 = vpop.f32.mrb[2].mxu1 }
 0x1cf   : > { %v671_v33 = vadd.f32 %v984_v32, %v851_v15  ;;  %v665_v34 = vpop.f32.mrb[3].mxu1 }
 0x1d0   : > { %v666_v35 = vadd.f32 %v851_v15, %v665_v34 }
 0x1d1   : > { %714 = vst.msk [vmem:[%s1259_s7 + $0x48] sm:$0xff] %vm704_vm1, %v671_v33 }
 0x1d2   : > { %713 = vst.msk [vmem:[%s1259_s7 + $0x40] sm:$0xff] %vm704_vm1, %v666_v35  ;;  %v987_v36 = vpop.f32.mrb[4].mxu1 }
 0x1d3   : > { %v681_v37 = vadd.f32 %v987_v36, %v851_v15  ;;  %v675_v38 = vpop.f32.mrb[5].mxu1 }
 0x1d4   : > { %v676_v39 = vadd.f32 %v851_v15, %v675_v38 }
 0x1d5   : > { %716 = vst.msk [vmem:[%s1259_s7 + $0x58] sm:$0xff] %vm704_vm1, %v681_v37 }
 0x1d6   : > { %715 = vst.msk [vmem:[%s1259_s7 + $0x50] sm:$0xff] %vm704_vm1, %v676_v39  ;;  %v990_v40 = vpop.f32.mrb[6].mxu1 }
 0x1d7   : > { %v691_v41 = vadd.f32 %v990_v40, %v851_v15  ;;  %v685_v42 = vpop.f32.mrb[7].mxu1 }
 0x1d8   : > { %v686_v43 = vadd.f32 %v851_v15, %v685_v42 }
 0x1d9   : > { %718 = vst.msk [vmem:[%s1259_s7 + $0x68] sm:$0xff] %vm704_vm1, %v691_v41 }
 0x1da   : > { %717 = vst.msk [vmem:[%s1259_s7 + $0x60] sm:$0xff] %vm704_vm1, %v686_v43  ;;  %v993_v44 = vpop.f32.mrb[8].mxu1 }
 0x1db   : > { %v701_v45 = vadd.f32 %v993_v44, %v851_v15  ;;  %v695_v46 = vpop.f32.mrb[9].mxu1 }
 0x1dc   : > { %v696_v47 = vadd.f32 %v851_v15, %v695_v46 }
 0x1dd   : > { %720 = vst.msk [vmem:[%s1259_s7 + $0x78] sm:$0xff] %vm704_vm1, %v701_v45 }
 0x1de   : > { %719 = vst.msk [vmem:[%s1259_s7 + $0x70] sm:$0xff] %vm704_vm1, %v696_v47 }
 0x1df PF: > { %s15_s20 = sadd.s32 1, %s1096_s20   ;;  %s1308_s18 = smov %s1092_s19 }
 0x1e0   : > { %p12_p5 = scmp.ge.s32.totalorder %s15_s20, 4   ;;  %s1309_s19 = smov %s1311_s21 }
 0x1e2   :  { %14 = sbr.rel (!%p12_p5) target bundleno = 2 (0x2), region = 80 }

</bundles_post_ra>
